<compile_context>
chip_gen: v7x
topology: tpu7x:2x2x1
jax: 0.10.0
libtpu: 0.0.40
codegen_flags: <defaults>
</compile_context>

<pallas_src>
import math
import functools

import jax
import jax.numpy as jnp
from jax.experimental import pallas as pl
from jax.experimental.pallas import tpu as pltpu

_LANE = 128
_NEG_BIG = -9e15            # matches the PyTorch -9e15 mask value


def _round_up(x, m):
    return ((x + m - 1) // m) * m


def _pick_tile(n, max_tile, *, min_blocks=1):
    """Largest multiple-of-128 divisor of n that is <= max_tile and leaves at
    least `min_blocks` grid steps; falls back to 128 (n is always a multiple
    of 128 here)."""
    best = None
    t = _LANE
    while t <= n:
        if n % t == 0 and t <= max_tile and n // t >= min_blocks:
            best = t
        t += _LANE
    return best if best is not None else _LANE


def pack_adjacency(adj, *, block=_LANE):
    """One-time adjacency packing: (adj > 0) as int8, zero-padded to a multiple
    of `block` rows/cols.  Do this ONCE per graph and cache it across forward
    calls -- converting inside the forward pass re-reads/writes ~N^2 bytes of
    HBM per call and gives back the 4x int8-streaming saving."""
    n = adj.shape[0]
    n_pad = _round_up(n, block)
    mask = (adj > 0).astype(jnp.int8)
    if n_pad != n:
        mask = jnp.pad(mask, ((0, n_pad - n), (0, n_pad - n)))
    return mask


# --------------------------------------------------------------------------
# Phase 1: projection.  wh = h @ W_stacked  (lane-dense, all heads fused) and
# both attention-logit pieces for every head in one small GEMM against a
# block-diagonal [A1 | A2]  ->  s12[:, h] = wh_h . a1_h, s12[:, H+h] = wh_h . a2_h
# --------------------------------------------------------------------------
def _project_kernel(h_ref, w_ref, a12_ref, wh_ref, s12_ref):
    wh = jnp.dot(h_ref[...], w_ref[...], preferred_element_type=jnp.float32)
    wh_ref[...] = wh
    s12_ref[...] = jnp.dot(wh, a12_ref[...], preferred_element_type=jnp.float32)


# --------------------------------------------------------------------------
# Phase 2: adjacency-masked online softmax + aggregation over kv tiles.
# Grid: (row blocks ["parallel"], kv blocks ["arbitrary"]).
# --------------------------------------------------------------------------
def _attention_kernel(alpha, n_heads, f_out, agg_dtype,
                      s1_ref, s2_ref, adj_ref, wh_ref, b_ref, out_ref,
                      m_sc, l_sc, acc_sc):
    kv = pl.program_id(1)

    @pl.when(kv == 0)
    def _():
        m_sc[...] = jnp.full_like(m_sc, -jnp.inf)
        l_sc[...] = jnp.zeros_like(l_sc)
        acc_sc[...] = jnp.zeros_like(acc_sc)

    edge = adj_ref[...] > 0                       # (tq, tk) -- shared by all heads
    s1_all = s1_ref[...]                          # (tq, H)
    s2_all = s2_ref[...]                          # (H, tk)
    wh_all = wh_ref[...]                          # (tk, H*F_out), lane-dense

    for hd in range(n_heads):                     # static unroll, H is small
        lo, hi = hd * f_out, (hd + 1) * f_out
        # e_ij = leaky_relu(wh_i . a1 + wh_j . a2); max-form LeakyReLU (0<alpha<1)
        e = s1_all[:, hd:hd + 1] + s2_all[hd:hd + 1, :]        # (tq, tk)
        e = jnp.maximum(e, alpha * e)
        e = jnp.where(edge, e, _NEG_BIG)

        # online-softmax (flash-style) accumulation across kv tiles
        m_prev = m_sc[hd]                                      # (tq, 1)
        m_new = jnp.maximum(m_prev, jnp.max(e, axis=1, keepdims=True))
        corr = jnp.exp(m_prev - m_new)                         # == 0 on first tile
        p = jnp.exp(e - m_new)                                 # unnormalised probs
        l_sc[hd] = corr * l_sc[hd] + jnp.sum(p, axis=1, keepdims=True)
        acc_sc[hd] = corr * acc_sc[hd] + jnp.dot(
            p.astype(agg_dtype), wh_all[:, lo:hi].astype(agg_dtype),
            preferred_element_type=jnp.float32)
        m_sc[hd] = m_new

    @pl.when(kv == pl.num_programs(1) - 1)
    def _():
        # Deferred softmax normalisation, bias, ELU -- one lane-dense store.
        # TODO(synk): F.dropout(attention, p, training) -- identity in eval mode.
        cols = []
        for hd in range(n_heads):
            inv = pl.reciprocal(l_sc[hd], approx=False)        # (tq, 1)
            cols.append(acc_sc[hd] * inv)                      # (tq, F_out)
        hp = (cols[0] if n_heads == 1 else jnp.concatenate(cols, axis=1))
        hp = hp + b_ref[...]
        # ELU (concat=True); clamp so the unselected branch never produces inf.
        out_ref[...] = jnp.where(hp > 0, hp, jnp.exp(jnp.minimum(hp, 0.0)) - 1.0)


def gat_forward(h, adj_mask, w, a, bias, *, alpha,
                block_rows=_LANE, block_cols=512, agg_dtype=jnp.float32):
    """GraphAttentionLayer forward (concat=True, eval mode).

    h        : (N, F_in) float32 node features
    adj_mask : cached int8 mask from pack_adjacency(adj)
    w        : (F_in, F_out) single head, or (H, F_in, F_out) fused heads
    a        : (2*F_out, 1)               or (H, 2*F_out, 1)
    bias     : (F_out,)                   or (H, F_out)
    Returns (N, H*F_out): per-head outputs concatenated along features.
    """
    if w.ndim == 2:                       # single head == exact PyTorch module
        w, a, bias = w[None], a[None], bias[None]
    n_heads, f_in, f_out = w.shape
    hf = n_heads * f_out
    n = h.shape[0]
    n_pad = _round_up(n, _LANE)

    # adjacency: expect the cached, padded int8 mask (slow fallback otherwise)
    if adj_mask.dtype != jnp.int8:
        adj_mask = (adj_mask > 0).astype(jnp.int8)
    if adj_mask.shape[0] == n and n_pad != n:
        adj_mask = jnp.pad(adj_mask, ((0, n_pad - n), (0, n_pad - n)))
    assert adj_mask.shape == (n_pad, n_pad), "pass pack_adjacency(adj)"

    if n_pad != n:
        h = jnp.pad(h, ((0, n_pad - n), (0, 0)))      # padded rows -> wh rows = 0

    # fused parameters: lane-dense W, block-diagonal attention vectors, bias row
    w_stacked = jnp.transpose(w, (1, 0, 2)).reshape(f_in, hf).astype(jnp.float32)
    a1 = a[:, :f_out, 0].astype(jnp.float32)          # (H, F_out)
    a2 = a[:, f_out:, 0].astype(jnp.float32)          # (H, F_out)
    eye = jnp.eye(n_heads, dtype=jnp.float32)
    a12 = jnp.concatenate(
        [(a1[:, :, None] * eye[:, None, :]).reshape(hf, n_heads),
         (a2[:, :, None] * eye[:, None, :]).reshape(hf, n_heads)], axis=1)
    bias_row = bias.reshape(1, hf).astype(jnp.float32)

    # tile choices (all divide n_pad, multiples of 128; >=2 row blocks when
    # possible so the "parallel" axis can shard across v7x's two TensorCores)
    tq1 = _pick_tile(n_pad, 1024, min_blocks=2)        # phase 1: big streaming tiles
    tq = _pick_tile(n_pad, block_rows, min_blocks=2)   # phase 2 query rows
    tk = _pick_tile(n_pad, block_cols)                 # phase 2 kv tiles (bounds VMEM)

    # VMEM budget (phase 2, per grid step, double-buffered pipeline):
    #   adj  2*tq*tk (int8)  +  wh  8*tk*hf  +  out 8*tq*hf  +  acc 4*tq*hf
    #   +  fp32 (tq,tk) e/p temporaries   ->  ~2 MiB at tq=128, tk=512, hf=128,
    # far below the 32 MiB scoped limit set here (fits v5e/v6e/v7x physical VMEM).
    compiler_args = dict(vmem_limit_bytes=32 * 1024 * 1024)

    # ---- phase 1: projection + attention-logit pieces -----------------------
    wh, s12 = pl.pallas_call(
        _project_kernel,
        out_shape=(jax.ShapeDtypeStruct((n_pad, hf), jnp.float32),
                   jax.ShapeDtypeStruct((n_pad, 2 * n_heads), jnp.float32)),
        grid=(n_pad // tq1,),
        in_specs=[pl.BlockSpec((tq1, f_in), lambda i: (i, 0)),
                  pl.BlockSpec((f_in, hf), lambda i: (0, 0)),
                  pl.BlockSpec((hf, 2 * n_heads), lambda i: (0, 0))],
        out_specs=(pl.BlockSpec((tq1, hf), lambda i: (i, 0)),
                   pl.BlockSpec((tq1, 2 * n_heads), lambda i: (i, 0))),
        compiler_params=pltpu.CompilerParams(
            dimension_semantics=("parallel",), **compiler_args),
    )(h.astype(jnp.float32), w_stacked, a12)

    s1 = s12[:, :n_heads]                 # (N_pad, H)  per-row  ("i") term
    s2t = s12[:, n_heads:].T              # (H, N_pad)  per-col  ("j") term (layout plumbing)

    # ---- phase 2: masked online softmax + aggregation over kv tiles ---------
    kernel = functools.partial(_attention_kernel, float(alpha), n_heads, f_out,
                               agg_dtype)
    out = pl.pallas_call(
        kernel,
        out_shape=jax.ShapeDtypeStruct((n_pad, hf), jnp.float32),
        grid=(n_pad // tq, n_pad // tk),
        in_specs=[pl.BlockSpec((tq, n_heads), lambda i, k: (i, 0)),
                  pl.BlockSpec((n_heads, tk), lambda i, k: (0, k)),
                  pl.BlockSpec((tq, tk), lambda i, k: (i, k)),
                  pl.BlockSpec((tk, hf), lambda i, k: (k, 0)),
                  pl.BlockSpec((1, hf), lambda i, k: (0, 0))],
        out_specs=pl.BlockSpec((tq, hf), lambda i, k: (i, 0)),
        scratch_shapes=[pltpu.VMEM((n_heads, tq, 1), jnp.float32),   # m
                        pltpu.VMEM((n_heads, tq, 1), jnp.float32),   # l
                        pltpu.VMEM((n_heads, tq, f_out), jnp.float32)],  # acc
        compiler_params=pltpu.CompilerParams(
            dimension_semantics=("parallel", "arbitrary"), **compiler_args),
    )(s1, s2t, adj_mask, wh, bias_row)

    return out[:n]


def _reference(h, adj, w, a, bias, *, alpha):
    f_out = w.shape[1]
    wh = h @ w
    e = wh @ a[:f_out, :] + (wh @ a[f_out:, :]).T
    e = jnp.where(e > 0, e, alpha * e)
    att = jnp.where(adj > 0, e, _NEG_BIG)
    att = jax.nn.softmax(att, axis=1)
    hp = att @ wh + bias
    return jnp.where(hp > 0, hp, jnp.exp(hp) - 1.0)


if __name__ == "__main__":
    N, F_IN, F_OUT, HEADS = 300, 64, 32, 4     # N % 128 != 0 -> exercises padding
    ALPHA = 0.2

    key = jax.random.PRNGKey(0)
    k_h, k_adj, k_w, k_a, k_b = jax.random.split(key, 5)

    h = jax.random.normal(k_h, (N, F_IN), dtype=jnp.float32)
    adj = (jax.random.uniform(k_adj, (N, N)) < 0.2).astype(jnp.float32)
    adj = jnp.maximum(adj, jnp.eye(N, dtype=jnp.float32))    # self-loops: no empty rows

    # deterministic parameter init (mirrors reset_parameters), H independent heads
    gain = 1.414
    w_bound = gain * math.sqrt(6.0 / (F_IN + F_OUT))
    w = jax.random.uniform(k_w, (HEADS, F_IN, F_OUT), minval=-w_bound,
                           maxval=w_bound, dtype=jnp.float32)
    a_bound = gain * math.sqrt(6.0 / (2 * F_OUT + 1))
    a = jax.random.uniform(k_a, (HEADS, 2 * F_OUT, 1), minval=-a_bound,
                           maxval=a_bound, dtype=jnp.float32)
    std = 1.0 / math.sqrt(F_OUT)
    bias = jax.random.uniform(k_b, (HEADS, F_OUT), minval=-std, maxval=std,
                              dtype=jnp.float32)

    adj_mask = pack_adjacency(adj)    # once per graph; cache across forward calls

    # 1) single head -- exact GraphAttentionLayer forward semantics
    out1 = jax.block_until_ready(
        gat_forward(h, adj_mask, w[0], a[0], bias[0], alpha=ALPHA))
    ref1 = _reference(h, adj, w[0], a[0], bias[0], alpha=ALPHA)
    assert out1.shape == (N, F_OUT)
    assert jnp.max(jnp.abs(out1 - ref1)) < 1e-4, "single-head mismatch vs reference"

    # 2) fused 4-head call (concat=True GAT stack): 4*32 = 128-lane output
    out4 = jax.block_until_ready(gat_forward(h, adj_mask, w, a, bias, alpha=ALPHA))
    ref4 = jnp.concatenate(
        [_reference(h, adj, w[i], a[i], bias[i], alpha=ALPHA) for i in range(HEADS)],
        axis=1)
    assert out4.shape == (N, HEADS * F_OUT)
    assert jnp.max(jnp.abs(out4 - ref4)) < 1e-4, "multi-head mismatch vs reference"

    print("KERNEL_OK")
</pallas_src>

<mosaic_0001>
module attributes {stable_mosaic.version = 11 : i64} {
  func.func @_project_kernel(%arg0: i32, %arg1: memref<128x64xf32, #tpu.memory_space<vmem>>, %arg2: memref<64x32xf32, #tpu.memory_space<vmem>>, %arg3: memref<32x2xf32, #tpu.memory_space<vmem>>, %arg4: memref<128x32xf32, #tpu.memory_space<vmem>>, %arg5: memref<128x2xf32, #tpu.memory_space<vmem>>) attributes {dimension_semantics = [#tpu.dimension_semantics<parallel>], iteration_bounds = array<i64: 3>, scalar_prefetch = 0 : i64, scratch_operands = 0 : i64, tpu.core_type = #tpu.core_type<tc>, window_params = [{transform_indices = @transform_0, window_bounds = array<i64: 128, 64>}, {pipeline_mode = #tpu.pipeline_mode<synchronous>, transform_indices = @transform_1, window_bounds = array<i64: 64, 32>}, {pipeline_mode = #tpu.pipeline_mode<synchronous>, transform_indices = @transform_2, window_bounds = array<i64: 32, 2>}, {transform_indices = @transform_3, window_bounds = array<i64: 128, 32>}, {transform_indices = @transform_4, window_bounds = array<i64: 128, 2>}]} {
    %c0 = arith.constant 0 : index
    %c0_0 = arith.constant 0 : index
    %0 = vector.load %arg1[%c0, %c0_0] : memref<128x64xf32, #tpu.memory_space<vmem>>, vector<128x64xf32>
    %c0_1 = arith.constant 0 : index
    %c0_2 = arith.constant 0 : index
    %1 = vector.load %arg2[%c0_1, %c0_2] : memref<64x32xf32, #tpu.memory_space<vmem>>, vector<64x32xf32>
    %cst = arith.constant dense<0.000000e+00> : vector<128x32xf32>
    %2 = tpu.matmul %0, %1, %cst {dimension_numbers = #tpu.dot_dimension_numbers<[1], [0], [0], [1], [0, 0, 1, 1], [], []>} : vector<128x64xf32>, vector<64x32xf32>, vector<128x32xf32> -> vector<128x32xf32>
    %c0_3 = arith.constant 0 : index
    %c0_4 = arith.constant 0 : index
    %3 = vector.load %arg4[%c0_3, %c0_4] : memref<128x32xf32, #tpu.memory_space<vmem>>, vector<128x32xf32>
    tpu.vector_store %arg4[%c0_3, %c0_4], %2 {strides = array<i32>} : memref<128x32xf32, #tpu.memory_space<vmem>>, vector<128x32xf32>,
    %c0_5 = arith.constant 0 : index
    %c0_6 = arith.constant 0 : index
    %4 = vector.load %arg3[%c0_5, %c0_6] : memref<32x2xf32, #tpu.memory_space<vmem>>, vector<32x2xf32>
    %cst_7 = arith.constant dense<0.000000e+00> : vector<128x2xf32>
    %5 = tpu.matmul %2, %4, %cst_7 {dimension_numbers = #tpu.dot_dimension_numbers<[1], [0], [0], [1], [0, 0, 1, 1], [], []>} : vector<128x32xf32>, vector<32x2xf32>, vector<128x2xf32> -> vector<128x2xf32>
    %c0_8 = arith.constant 0 : index
    %c0_9 = arith.constant 0 : index
    %6 = vector.load %arg5[%c0_8, %c0_9] : memref<128x2xf32, #tpu.memory_space<vmem>>, vector<128x2xf32>
    tpu.vector_store %arg5[%c0_8, %c0_9], %5 {strides = array<i32>} : memref<128x2xf32, #tpu.memory_space<vmem>>, vector<128x2xf32>,
    return
  }
  func.func @transform_0(%arg0: i32) -> (i32, i32) {
    %c0_i32 = arith.constant 0 : i32
    %c0_i32_0 = arith.constant 0 : i32
    return %arg0, %c0_i32 : i32, i32
  }
  func.func @transform_1(%arg0: i32) -> (i32, i32) {
    %c0_i32 = arith.constant 0 : i32
    %c0_i32_0 = arith.constant 0 : i32
    %c0_i32_1 = arith.constant 0 : i32
    return %c0_i32, %c0_i32_0 : i32, i32
  }
  func.func @transform_2(%arg0: i32) -> (i32, i32) {
    %c0_i32 = arith.constant 0 : i32
    %c0_i32_0 = arith.constant 0 : i32
    %c0_i32_1 = arith.constant 0 : i32
    return %c0_i32, %c0_i32_0 : i32, i32
  }
  func.func @transform_3(%arg0: i32) -> (i32, i32) {
    %c0_i32 = arith.constant 0 : i32
    %c0_i32_0 = arith.constant 0 : i32
    return %arg0, %c0_i32 : i32, i32
  }
  func.func @transform_4(%arg0: i32) -> (i32, i32) {
    %c0_i32 = arith.constant 0 : i32
    %c0_i32_0 = arith.constant 0 : i32
    return %arg0, %c0_i32 : i32, i32
  }
}

</mosaic_0001>

<bundles_post_ra>
// kernel: tpu_custom_call.1
= control target key start
LH: loop header
LB: loop body
LE: loop exit
PB: predicated region body
PF: predicated region fallthrough
CT: control target
= control target key end

     0   :  { %s980_s15 = smov 0   ;;  %s1159_s0 = inlined_call_operand.vmem [shape: f32[384,64], index: 0, kind: input, shape index: {}]   ;;  %s1160_s1 = inlined_call_operand.vmem [shape: f32[64,32], index: 1, kind: input, shape index: {}]   ;;  %s1161_s2 = inlined_call_operand.vmem [shape: f32[32,2], index: 2, kind: input, shape index: {}]   ;;  %s1162_s3 = inlined_call_operand.vmem [shape: f32[384,32], index: 3, kind: output, shape index: {0}]   ;;  %s1163_s4 = inlined_call_operand.vmem [shape: f32[384,2], index: 4, kind: output, shape index: {1}]  }
   0x1 LB: > { %s754_s16 = sadd.s32 4294967295, %s953_s15   ;;  %p758_p0 = scmp.ge.s32.totalorder %s953_s15, 1  ;;  %s953_s15 = sphi %s980_s15, %s15_s15  }
   0x2   : > { %p166_p1 = scmp.lt.s32.totalorder %s953_s15, 4 }
   0x4   : > { %p167_p2 = pnand %p758_p0, %p166_p1 }
   0x5   : > { %v231_v0 = vld [vmem:[%s1160_s1] sm:$0xff] (!%p167_p2)  ;;  %v232_v1 = vld [vmem:[%s1160_s1 + $0x8] sm:$0xff] (!%p167_p2)  ;;  %v233_v2 = vld [vmem:[%s1160_s1 + $0x10] sm:$0xff] (!%p167_p2)  ;;  %s759_s23 = sshll.u32 (!%p167_p2), %s754_s16, 4  ;;  %vm239_vm0 = vcmask (!%p167_p2), 523264   ;;  %vm433_vm1 = vcmask (!%p167_p2), 261120  }
   0x6   : > { %170 = sbr.rel (%p167_p2) target bundleno = 480 (0x1e0), region = 32  ;;  %v915_v3 = vpack.c.bf16 (!%p167_p2), %v232_v1, %v231_v0  ;;  %v234_v4 = vld [vmem:[%s1160_s1 + $0x18] sm:$0xff] (!%p167_p2)  ;;  %p198_p3 = scmp.lt.s32.totalorder (!%p167_p2), %s759_s23, 47  ;;  %v235_v6 = vld [vmem:[%s1160_s1 + $0x20] sm:$0xff] (!%p167_p2)  ;;  %v236_v7 = vld [vmem:[%s1160_s1 + $0x28] sm:$0xff] (!%p167_p2)  ;;  %vm647_vm2 = vcmask (!%p167_p2), 15360  }
   0x7   : > { %v919_v5 = vpack.c.bf16 (!%p167_p2), %v234_v4, %v233_v2  ;;  %v450_v8 = vld [vmem:[%s1161_s2] sm:$0xff] (!%p167_p2)  ;;  %v451_v9 = vld [vmem:[%s1161_s2 + $0x8] sm:$0xff] (!%p167_p2)  ;;  %v452_v10 = vld [vmem:[%s1161_s2 + $0x10] sm:$0xff] (!%p167_p2)  ;;  %v923_v13 = vpack.c.bf16 (!%p167_p2), %v236_v7, %v235_v6 }
   0x8   : > { %916 = vmatprep.subr.bf16.mxu0 (!%p167_p2), %v915_v3  ;;  %v453_v11 = vld [vmem:[%s1161_s2 + $0x18] sm:$0xff] (!%p167_p2)  ;;  %v931_v12 = vpack.c.bf16 (!%p167_p2), %v451_v9, %v450_v8  ;;  %v237_v15 = vld [vmem:[%s1160_s1 + $0x30] sm:$0xff] (!%p167_p2) }
   0x9   : > { %918 = vmatpush3.bf16.msra.mxu0 (!%p167_p2), %v915_v3  ;;  %v935_v14 = vpack.c.bf16 (!%p167_p2), %v453_v11, %v452_v10  ;;  %v238_v16 = vld [vmem:[%s1160_s1 + $0x38] sm:$0xff] (!%p167_p2) }
   0xa   : > { %920 = vmatprep.subr.bf16.mxu0 (!%p167_p2), %v919_v5  ;;  %932 = vmatprep.subr.bf16.mxu1 (!%p167_p2), %v931_v12  ;;  %v927_v18 = vpack.c.bf16 (!%p167_p2), %v238_v16, %v237_v15 }
   0xb   : > { %934 = vmatpush3.bf16.msra.mxu1 (!%p167_p2), %v931_v12 }
   0xc   : > { %936 = vmatprep.subr.bf16.mxu1 (!%p167_p2), %v935_v14 }
   0xd   : > { %s1165_s23 = smov (!%p198_p3, %s759_s23), 47  ;;  %922 = vmatpush3.bf16.msra.mxu0 %v919_v5 }
   0xe   : > { %s1018_s12 = sshll.u32 %s1165_s23, 3  ;;  %924 = vmatprep.subr.bf16.mxu0 %v923_v13 }
   0xf   : > { %s1030_s20 = scalar_lea.vmem %s1159_s0, %s1018_s12  ;;  %938 = vmatpush3.bf16.msra.mxu1 %v935_v14  ;;  %s1068_s23 = scalar_lea.vmem %s1162_s3, %s1018_s12 }
  0x10   : > { %v215_v17 = vld [vmem:[%s1030_s20] sm:$0xff]  ;;  %v216_v19 = vld [vmem:[%s1030_s20 + $0x8] sm:$0xff]  ;;  %v217_v20 = vld [vmem:[%s1030_s20 + $0x10] sm:$0xff]  ;;  %s1122_s26 = scalar_lea.vmem %s1163_s4, %s1018_s12 }
  0x11   : > { %859 = vmatprep.mubr.msk.f32.mxu0 %vm239_vm0, %v215_v17  ;;  %926 = vmatpush3.bf16.msra.mxu0 %v923_v13  ;;  %v218_v21 = vld [vmem:[%s1030_s20 + $0x18] sm:$0xff]  ;;  %v219_v22 = vld [vmem:[%s1030_s20 + $0x20] sm:$0xff]  ;;  %v220_v23 = vld [vmem:[%s1030_s20 + $0x28] sm:$0xff] }
  0x12   : > { %928 = vmatprep.subr.bf16.mxu0 %v927_v18  ;;  %v221_v24 = vld [vmem:[%s1030_s20 + $0x30] sm:$0xff]  ;;  %v222_v25 = vld [vmem:[%s1030_s20 + $0x38] sm:$0xff]  ;;  %v223_v26 = vld [vmem:[%s1030_s20 + $0x40] sm:$0xff] }
  0x13   : > { %v224_v27 = vld [vmem:[%s1030_s20 + $0x48] sm:$0xff]  ;;  %v225_v28 = vld [vmem:[%s1030_s20 + $0x50] sm:$0xff]  ;;  %v226_v29 = vld [vmem:[%s1030_s20 + $0x58] sm:$0xff] }
  0x14   : > { %v227_v30 = vld [vmem:[%s1030_s20 + $0x60] sm:$0xff]  ;;  %v228_v31 = vld [vmem:[%s1030_s20 + $0x68] sm:$0xff]  ;;  %v229_v32 = vld [vmem:[%s1030_s20 + $0x70] sm:$0xff] }
  0x15   : > { %930 = vmatpush3.bf16.msra.mxu0 %v927_v18  ;;  %v230_v33 = vld [vmem:[%s1030_s20 + $0x78] sm:$0xff] }
  0x18   : > { %860 = vmatmul.mubr.msk.f32.vlgmr.msra.gmra.mrb[0].mxu0 %vm239_vm0, %v216_v19 }
  0x19   : > { %862 = vmatprep.mubr.msk.f32.mxu0 %vm239_vm0, %v217_v20 }
  0x1c   : > { %863 = vmatmul.mubr.msk.f32.gmra.mrb[2].mxu0 %vm239_vm0, %v218_v21 }
  0x1d   : > { %865 = vmatprep.mubr.msk.f32.mxu0 %vm239_vm0, %v219_v22 }
  0x20   : > { %866 = vmatmul.mubr.msk.f32.gmra.mrb[4].mxu0 %vm239_vm0, %v220_v23 }
  0x21   : > { %868 = vmatprep.mubr.msk.f32.mxu0 %vm239_vm0, %v221_v24 }
  0x24   : > { %869 = vmatmul.mubr.msk.f32.gmra.mrb[6].mxu0 %vm239_vm0, %v222_v25 }
  0x25   : > { %871 = vmatprep.mubr.msk.f32.mxu0 %vm239_vm0, %v223_v26 }
  0x28   : > { %872 = vmatmul.mubr.msk.f32.gmra.mrb[8].mxu0 %vm239_vm0, %v224_v27 }
  0x29   : > { %874 = vmatprep.mubr.msk.f32.mxu0 %vm239_vm0, %v225_v28 }
  0x2c   : > { %875 = vmatmul.mubr.msk.f32.gmra.mrb[10].mxu0 %vm239_vm0, %v226_v29 }
  0x2d   : > { %877 = vmatprep.mubr.msk.f32.mxu0 %vm239_vm0, %v227_v30 }
  0x30   : > { %878 = vmatmul.mubr.msk.f32.gmra.mrb[12].mxu0 %vm239_vm0, %v228_v31 }
  0x31   : > { %880 = vmatprep.mubr.msk.f32.mxu0 %vm239_vm0, %v229_v32 }
  0x34   : > { %881 = vmatmul.mubr.msk.f32.gmra.mrb[14].mxu0 %vm239_vm0, %v230_v33 }
  0xeb   : > { %v861_v34 = vpop.f32.mrb[0].mxu0 }
  0xec   : > { %435 = vst.msk [vmem:[%s1068_s23 + $0x8] sm:$0xff] %vm433_vm1, %v861_v34  ;;  %v354_v35 = vpop.f32.mrb[1].mxu0 }
  0xed   : > { %434 = vst.msk [vmem:[%s1068_s23] sm:$0xff] %vm433_vm1, %v354_v35  ;;  %891 = vmatprep.mubr.msk.f32.mxu1 %vm433_vm1, %v354_v35 }
  0xee   : > { %892 = vmatmul.mubr.msk.f32.vlgmr.msra.gmra.mrb[0].mxu1 %vm433_vm1, %v861_v34 }
  0xef   : > { %v864_v36 = vpop.f32.mrb[2].mxu0 }
  0xf0   : > { %437 = vst.msk [vmem:[%s1068_s23 + $0x18] sm:$0xff] %vm433_vm1, %v864_v36  ;;  %v364_v37 = vpop.f32.mrb[3].mxu0 }
  0xf1   : > { %436 = vst.msk [vmem:[%s1068_s23 + $0x10] sm:$0xff] %vm433_vm1, %v364_v37  ;;  %894 = vmatprep.mubr.msk.f32.mxu1 %vm433_vm1, %v364_v37 }
  0xf2   : > { %895 = vmatmul.mubr.msk.f32.gmra.mrb[2].mxu1 %vm433_vm1, %v864_v36 }
  0xf3   : > { %v867_v38 = vpop.f32.mrb[4].mxu0 }
  0xf4   : > { %439 = vst.msk [vmem:[%s1068_s23 + $0x28] sm:$0xff] %vm433_vm1, %v867_v38  ;;  %v374_v39 = vpop.f32.mrb[5].mxu0 }
  0xf5   : > { %438 = vst.msk [vmem:[%s1068_s23 + $0x20] sm:$0xff] %vm433_vm1, %v374_v39  ;;  %897 = vmatprep.mubr.msk.f32.mxu1 %vm433_vm1, %v374_v39 }
  0xf6   : > { %898 = vmatmul.mubr.msk.f32.gmra.mrb[4].mxu1 %vm433_vm1, %v867_v38 }
  0xf7   : > { %v870_v40 = vpop.f32.mrb[6].mxu0 }
  0xf8   : > { %441 = vst.msk [vmem:[%s1068_s23 + $0x38] sm:$0xff] %vm433_vm1, %v870_v40  ;;  %v384_v41 = vpop.f32.mrb[7].mxu0 }
  0xf9   : > { %440 = vst.msk [vmem:[%s1068_s23 + $0x30] sm:$0xff] %vm433_vm1, %v384_v41  ;;  %900 = vmatprep.mubr.msk.f32.mxu1 %vm433_vm1, %v384_v41 }
  0xfa   : > { %901 = vmatmul.mubr.msk.f32.gmra.mrb[6].mxu1 %vm433_vm1, %v870_v40 }
  0xfb   : > { %v873_v42 = vpop.f32.mrb[8].mxu0 }
  0xfc   : > { %443 = vst.msk [vmem:[%s1068_s23 + $0x48] sm:$0xff] %vm433_vm1, %v873_v42  ;;  %v394_v43 = vpop.f32.mrb[9].mxu0 }
  0xfd   : > { %442 = vst.msk [vmem:[%s1068_s23 + $0x40] sm:$0xff] %vm433_vm1, %v394_v43  ;;  %903 = vmatprep.mubr.msk.f32.mxu1 %vm433_vm1, %v394_v43 }
  0xfe   : > { %904 = vmatmul.mubr.msk.f32.gmra.mrb[8].mxu1 %vm433_vm1, %v873_v42 }
  0xff   : > { %v876_v44 = vpop.f32.mrb[10].mxu0 }
 0x100   : > { %445 = vst.msk [vmem:[%s1068_s23 + $0x58] sm:$0xff] %vm433_vm1, %v876_v44  ;;  %v404_v45 = vpop.f32.mrb[11].mxu0 }
 0x101   : > { %444 = vst.msk [vmem:[%s1068_s23 + $0x50] sm:$0xff] %vm433_vm1, %v404_v45  ;;  %906 = vmatprep.mubr.msk.f32.mxu1 %vm433_vm1, %v404_v45 }
 0x102   : > { %907 = vmatmul.mubr.msk.f32.gmra.mrb[10].mxu1 %vm433_vm1, %v876_v44 }
 0x103   : > { %v879_v46 = vpop.f32.mrb[12].mxu0 }
 0x104   : > { %447 = vst.msk [vmem:[%s1068_s23 + $0x68] sm:$0xff] %vm433_vm1, %v879_v46  ;;  %v414_v47 = vpop.f32.mrb[13].mxu0 }
 0x105   : > { %446 = vst.msk [vmem:[%s1068_s23 + $0x60] sm:$0xff] %vm433_vm1, %v414_v47  ;;  %909 = vmatprep.mubr.msk.f32.mxu1 %vm433_vm1, %v414_v47 }
 0x106   : > { %910 = vmatmul.mubr.msk.f32.gmra.mrb[12].mxu1 %vm433_vm1, %v879_v46 }
 0x107   : > { %v882_v48 = vpop.f32.mrb[14].mxu0 }
 0x108   : > { %449 = vst.msk [vmem:[%s1068_s23 + $0x78] sm:$0xff] %vm433_vm1, %v882_v48  ;;  %v424_v49 = vpop.f32.mrb[15].mxu0 }
 0x109   : > { %448 = vst.msk [vmem:[%s1068_s23 + $0x70] sm:$0xff] %vm433_vm1, %v424_v49  ;;  %912 = vmatprep.mubr.msk.f32.mxu1 %vm433_vm1, %v424_v49 }
 0x10a   : > { %913 = vmatmul.mubr.msk.f32.gmra.mrb[14].mxu1 %vm433_vm1, %v882_v48 }
 0x1c1   : > { %v893_v50 = vpop.f32.mrb[0].mxu1 }
 0x1c2   : > { %649 = vst.msk [vmem:[%s1122_s26 + $0x8] sm:$0xff] %vm647_vm2, %v893_v50  ;;  %v568_v51 = vpop.f32.mrb[1].mxu1 }
 0x1c3   : > { %648 = vst.msk [vmem:[%s1122_s26] sm:$0xff] %vm647_vm2, %v568_v51 }
 0x1c5   : > { %v896_v52 = vpop.f32.mrb[2].mxu1 }
 0x1c6   : > { %651 = vst.msk [vmem:[%s1122_s26 + $0x18] sm:$0xff] %vm647_vm2, %v896_v52  ;;  %v578_v53 = vpop.f32.mrb[3].mxu1 }
 0x1c7   : > { %650 = vst.msk [vmem:[%s1122_s26 + $0x10] sm:$0xff] %vm647_vm2, %v578_v53 }
 0x1c9   : > { %v899_v54 = vpop.f32.mrb[4].mxu1 }
 0x1ca   : > { %653 = vst.msk [vmem:[%s1122_s26 + $0x28] sm:$0xff] %vm647_vm2, %v899_v54  ;;  %v588_v55 = vpop.f32.mrb[5].mxu1 }
 0x1cb   : > { %652 = vst.msk [vmem:[%s1122_s26 + $0x20] sm:$0xff] %vm647_vm2, %v588_v55 }
 0x1cd   : > { %v902_v56 = vpop.f32.mrb[6].mxu1 }
 0x1ce   : > { %655 = vst.msk [vmem:[%s1122_s26 + $0x38] sm:$0xff] %vm647_vm2, %v902_v56  ;;  %v598_v57 = vpop.f32.mrb[7].mxu1 }
 0x1cf   : > { %654 = vst.msk [vmem:[%s1122_s26 + $0x30] sm:$0xff] %vm647_vm2, %v598_v57 }
 0x1d1   : > { %v905_v58 = vpop.f32.mrb[8].mxu1 }
 0x1d2   : > { %657 = vst.msk [vmem:[%s1122_s26 + $0x48] sm:$0xff] %vm647_vm2, %v905_v58  ;;  %v608_v59 = vpop.f32.mrb[9].mxu1 }
 0x1d3   : > { %656 = vst.msk [vmem:[%s1122_s26 + $0x40] sm:$0xff] %vm647_vm2, %v608_v59 }
 0x1d5   : > { %v908_v60 = vpop.f32.mrb[10].mxu1 }
 0x1d6   : > { %659 = vst.msk [vmem:[%s1122_s26 + $0x58] sm:$0xff] %vm647_vm2, %v908_v60  ;;  %v618_v61 = vpop.f32.mrb[11].mxu1 }
 0x1d7   : > { %658 = vst.msk [vmem:[%s1122_s26 + $0x50] sm:$0xff] %vm647_vm2, %v618_v61 }
 0x1d9   : > { %v911_v62 = vpop.f32.mrb[12].mxu1 }
 0x1da   : > { %661 = vst.msk [vmem:[%s1122_s26 + $0x68] sm:$0xff] %vm647_vm2, %v911_v62  ;;  %v628_v63 = vpop.f32.mrb[13].mxu1 }
 0x1db   : > { %660 = vst.msk [vmem:[%s1122_s26 + $0x60] sm:$0xff] %vm647_vm2, %v628_v63 }
 0x1dd   : > { %v914_v0 = vpop.f32.mrb[14].mxu1 }
 0x1de   : > { %663 = vst.msk [vmem:[%s1122_s26 + $0x78] sm:$0xff] %vm647_vm2, %v914_v0  ;;  %v638_v1 = vpop.f32.mrb[15].mxu1 }
 0x1df   : > { %662 = vst.msk [vmem:[%s1122_s26 + $0x70] sm:$0xff] %vm647_vm2, %v638_v1 }
 0x1e0 PF: > { %s15_s15 = sadd.s32 1, %s953_s15  }
 0x1e1   : > { %p12_p4 = scmp.ge.s32.totalorder %s15_s15, 5  }
 0x1e3   :  { %14 = sbr.rel (!%p12_p4) target bundleno = 1 (0x1), region = 74 }

</bundles_post_ra>
